<compile_context>
chip_gen: v5e
topology: v5e:2x2
jax: 0.10.0
libtpu: 0.0.40
codegen_flags: <defaults>
</compile_context>

<pallas_src>
import functools

import jax
import jax.numpy as jnp
from jax import lax
from jax.experimental import pallas as pl
from jax.experimental.pallas import tpu as pltpu

EPSILON = 1e-5


def _cond_layernorm_kernel(x_ref, sb_ref, o_ref, *, inv_c, use_mxu):
    # x_ref:  (1, C, tT)   channels on sublanes, time on lanes
    # sb_ref: (1, 2, C, 1) packed speaker affine: [b, 0]=scale, [b, 1]=bias
    # o_ref:  (1, C, tT)
    x = x_ref[0].astype(jnp.float32)                          # (C, tT)

    # Single-pass moments over channels (each time column is independent).
    if use_mxu:
        # Wide-C: do the cross-sublane reduction on the idle MXU.
        ones = jnp.ones((1, x.shape[0]), jnp.float32)
        s1 = jnp.dot(ones, x, preferred_element_type=jnp.float32)       # (1, tT)
        s2 = jnp.dot(ones, x * x, preferred_element_type=jnp.float32)   # (1, tT)
    else:
        s1 = jnp.sum(x, axis=0, keepdims=True)                # (1, tT)
        s2 = jnp.sum(x * x, axis=0, keepdims=True)            # (1, tT)
    mean = s1 * inv_c
    var = jnp.maximum(s2 * inv_c - mean * mean, 0.0)          # clamp: E[x^2]-E[x]^2 rounding
    y = (x - mean) * lax.rsqrt(var + EPSILON)                 # (C, tT), rsqrt on EUP

    scale = sb_ref[0, 0].astype(jnp.float32)                  # (C, 1)
    bias = sb_ref[0, 1].astype(jnp.float32)                   # (C, 1)
    o_ref[0] = (y * scale + bias).astype(o_ref.dtype)


def _choose_time_tile(B, C, T, itemsize):
    """Lane-dense (multiple-of-128) time tile.

    Targets (perf review): blocks as large as ~4 MiB to amortize the ~0.35 us
    per-grid-step cost, a VMEM budget that also charges the in-kernel f32
    temporaries (fits the v5e 16 MiB scoped default with the explicit 32 MiB
    limit we set), and >= 4 total grid steps so v7x's 2 TCs both get work.
    """
    itemsize = max(int(itemsize), 1)
    if T <= 128:
        return T                                   # full-dim block (exempt from 128 rule)

    # Bytes of VMEM per time column:
    #   2 (in+out) * 2 (double-buffer) * itemsize   HBM-backed block buffers
    #   + ~3 * 4                                    live f32 temporaries (x, x*x, y)
    bytes_per_col = C * (4 * itemsize + 3 * 4)
    vmem_budget = 10 << 20                         # conservative across v5e/v6e/v7x
    target_block = 4 << 20                         # bigger buys nothing once amortized

    units_vmem = max(1, (vmem_budget // bytes_per_col) // 128)
    units_tgt = max(1, (target_block // (C * itemsize)) // 128)
    units = min(max(1, T // 128), units_vmem, units_tgt)

    # Preserve grid parallelism for v7x's 2 TensorCores (and pipelining).
    while units > 1 and B * pl.cdiv(T, units * 128) < 4:
        units = max(1, units // 2)
    return units * 128


def speaker_adapter(x_nct, speaker_embedding, w_scale, b_scale, w_bias, b_bias):
    """x_nct: (B, C, T); speaker_embedding: (B, S).
    w_scale/w_bias: (C, S) like nn.Linear.weight; b_scale/b_bias: (C,)."""
    B, C, T = x_nct.shape

    # Hoist the speaker affine out of the kernel: one fused (B,S)@(S,2C) matmul
    # in XLA, packed into a single (B, 2, C, 1) array ([b,0]=scale, [b,1]=bias)
    # so the kernel needs only one small resident VMEM buffer for it.
    w_cat = jnp.concatenate([w_scale, w_bias], axis=0)                   # (2C, S)
    b_cat = jnp.concatenate([b_scale, b_bias], axis=0)                   # (2C,)
    sb = (speaker_embedding.astype(jnp.float32)
          @ w_cat.T.astype(jnp.float32)) + b_cat.astype(jnp.float32)     # (B, 2C)
    sb = sb.reshape(B, 2, C, 1)

    tT = _choose_time_tile(B, C, T, x_nct.dtype.itemsize)
    grid = (B, pl.cdiv(T, tT))                    # masked tail block handles ragged T

    kernel = functools.partial(
        _cond_layernorm_kernel, inv_c=1.0 / C, use_mxu=(C >= 256))

    return pl.pallas_call(
        kernel,
        out_shape=jax.ShapeDtypeStruct((B, C, T), x_nct.dtype),
        grid_spec=pltpu.PrefetchScalarGridSpec(
            num_scalar_prefetch=0,
            grid=grid,
            in_specs=[
                pl.BlockSpec((1, C, tT), lambda b, t: (b, 0, t)),        # x (NCT)
                pl.BlockSpec((1, 2, C, 1), lambda b, t: (b, 0, 0, 0)),   # packed scale/bias
            ],
            out_specs=pl.BlockSpec((1, C, tT), lambda b, t: (b, 0, t)),
        ),
        compiler_params=pltpu.CompilerParams(
            dimension_semantics=("parallel", "parallel"),
            vmem_limit_bytes=32 << 20),           # raise v5e's 16 MiB scoped default
    )(x_nct, sb)


def speaker_adapter_ref(x_nct, emb, w_scale, b_scale, w_bias, b_bias):
    """Pure-JAX reference mirroring the PyTorch forward."""
    x = jnp.transpose(x_nct, (0, 2, 1))                    # (B, T, C)
    mean = jnp.mean(x, axis=-1, keepdims=True)
    var = jnp.mean((x - mean) ** 2, axis=-1, keepdims=True)
    y = (x - mean) / jnp.sqrt(var + EPSILON)
    scale = emb @ w_scale.T + b_scale                      # (B, C)
    bias = emb @ w_bias.T + b_bias                         # (B, C)
    y = y * scale[:, None, :] + bias[:, None, :]
    return jnp.transpose(y, (0, 2, 1))


if __name__ == "__main__":
    key = jax.random.PRNGKey(0)
    kx, ke, kw1, kw2, kb1, kb2, kx2, kx3 = jax.random.split(key, 8)

    # Small shapes consistent with the module: batch=2, adapter_dim(C)=32,
    # seq(T)=16, speaker_dim(S)=8.
    B, C, T, S = 2, 32, 16, 8

    x = jax.random.normal(kx, (B, C, T), dtype=jnp.float32)
    speaker_embedding = jax.random.normal(ke, (B, S), dtype=jnp.float32)

    # reset_parameters() sets W*=0, b_scale=1, b_bias=0; add a small
    # deterministic perturbation so the affine path is actually exercised.
    w_scale = jnp.zeros((C, S), jnp.float32) + 0.05 * jax.random.normal(kw1, (C, S))
    b_scale = jnp.ones((C,), jnp.float32) + 0.05 * jax.random.normal(kb1, (C,))
    w_bias = jnp.zeros((C, S), jnp.float32) + 0.05 * jax.random.normal(kw2, (C, S))
    b_bias = jnp.zeros((C,), jnp.float32) + 0.05 * jax.random.normal(kb2, (C,))

    out = speaker_adapter(x, speaker_embedding, w_scale, b_scale, w_bias, b_bias)
    out = jax.block_until_ready(out)
    ref = speaker_adapter_ref(x, speaker_embedding, w_scale, b_scale, w_bias, b_bias)
    assert out.shape == (B, C, T)
    assert jnp.allclose(out, ref, atol=1e-4, rtol=1e-4), "mismatch vs reference (small T)"

    # Longer, lane-dense T exercises the tiled (multi-block) grid path.
    T2 = 4096
    x2 = jax.random.normal(kx2, (B, C, T2), dtype=jnp.float32)
    out2 = speaker_adapter(x2, speaker_embedding, w_scale, b_scale, w_bias, b_bias)
    out2 = jax.block_until_ready(out2)
    ref2 = speaker_adapter_ref(x2, speaker_embedding, w_scale, b_scale, w_bias, b_bias)
    assert out2.shape == (B, C, T2)
    assert jnp.allclose(out2, ref2, atol=1e-4, rtol=1e-4), "mismatch vs reference (tiled T)"

    # Ragged T (not a multiple of 128) exercises the masked tail block.
    T3 = 300
    x3 = jax.random.normal(kx3, (B, C, T3), dtype=jnp.float32)
    out3 = speaker_adapter(x3, speaker_embedding, w_scale, b_scale, w_bias, b_bias)
    out3 = jax.block_until_ready(out3)
    ref3 = speaker_adapter_ref(x3, speaker_embedding, w_scale, b_scale, w_bias, b_bias)
    assert out3.shape == (B, C, T3)
    assert jnp.allclose(out3, ref3, atol=1e-4, rtol=1e-4), "mismatch vs reference (ragged T)"

    print("KERNEL_OK")
</pallas_src>

<mosaic_0001>
module attributes {stable_mosaic.version = 11 : i64} {
  func.func @_cond_layernorm_kernel(%arg0: i32, %arg1: i32, %arg2: memref<1x32x16xf32, #tpu.memory_space<vmem>>, %arg3: memref<1x2x32x1xf32, #tpu.memory_space<vmem>>, %arg4: memref<1x32x16xf32, #tpu.memory_space<vmem>>) attributes {dimension_semantics = [#tpu.dimension_semantics<parallel>, #tpu.dimension_semantics<parallel>], iteration_bounds = array<i64: 2, 1>, scalar_prefetch = 0 : i64, scratch_operands = 0 : i64, tpu.core_type = #tpu.core_type<tc>, window_params = [{transform_indices = @transform_0, window_bounds = array<i64: 1, 32, 16>}, {transform_indices = @transform_1, window_bounds = array<i64: 1, 2, 32, 1>}, {transform_indices = @transform_2, window_bounds = array<i64: 1, 32, 16>}]} {
    %c0 = arith.constant 0 : index
    %c0_0 = arith.constant 0 : index
    %c0_1 = arith.constant 0 : index
    %0 = vector.load %arg2[%c0, %c0_0, %c0_1] : memref<1x32x16xf32, #tpu.memory_space<vmem>>, vector<1x32x16xf32>
    %1 = vector.shape_cast %0 : vector<1x32x16xf32> to vector<32x16xf32>
    %cst = arith.constant dense<0.000000e+00> : vector<16xf32>
    %2 = vector.multi_reduction <add>, %1, %cst [0] : vector<32x16xf32> to vector<16xf32>
    %3 = vector.shape_cast %2 : vector<16xf32> to vector<1x16xf32>
    %4 = arith.mulf %1, %1 : vector<32x16xf32>
    %cst_2 = arith.constant dense<0.000000e+00> : vector<16xf32>
    %5 = vector.multi_reduction <add>, %4, %cst_2 [0] : vector<32x16xf32> to vector<16xf32>
    %6 = vector.shape_cast %5 : vector<16xf32> to vector<1x16xf32>
    %cst_3 = arith.constant 3.125000e-02 : f32
    %7 = vector.broadcast %cst_3 : f32 to vector<1x16xf32>
    %8 = arith.mulf %3, %7 : vector<1x16xf32>
    %cst_4 = arith.constant 3.125000e-02 : f32
    %9 = vector.broadcast %cst_4 : f32 to vector<1x16xf32>
    %10 = arith.mulf %6, %9 : vector<1x16xf32>
    %11 = arith.mulf %8, %8 : vector<1x16xf32>
    %12 = arith.subf %10, %11 : vector<1x16xf32>
    %cst_5 = arith.constant 0.000000e+00 : f32
    %13 = vector.broadcast %cst_5 : f32 to vector<1x16xf32>
    %14 = arith.maximumf %12, %13 : vector<1x16xf32>
    %15 = vector.broadcast %8 : vector<1x16xf32> to vector<32x16xf32>
    %16 = arith.subf %1, %15 : vector<32x16xf32>
    %cst_6 = arith.constant 9.99999974E-6 : f32
    %17 = vector.broadcast %cst_6 : f32 to vector<1x16xf32>
    %18 = arith.addf %14, %17 : vector<1x16xf32>
    %19 = math.rsqrt %18 : vector<1x16xf32>
    %20 = vector.broadcast %19 : vector<1x16xf32> to vector<32x16xf32>
    %21 = arith.mulf %16, %20 : vector<32x16xf32>
    %c0_7 = arith.constant 0 : index
    %c0_8 = arith.constant 0 : index
    %c0_9 = arith.constant 0 : index
    %c0_10 = arith.constant 0 : index
    %22 = vector.load %arg3[%c0_7, %c0_8, %c0_9, %c0_10] : memref<1x2x32x1xf32, #tpu.memory_space<vmem>>, vector<1x1x32x1xf32>
    %23 = vector.shape_cast %22 : vector<1x1x32x1xf32> to vector<32x1xf32>
    %c0_11 = arith.constant 0 : index
    %c1 = arith.constant 1 : index
    %c0_12 = arith.constant 0 : index
    %c0_13 = arith.constant 0 : index
    %24 = vector.load %arg3[%c0_11, %c1, %c0_12, %c0_13] : memref<1x2x32x1xf32, #tpu.memory_space<vmem>>, vector<1x1x32x1xf32>
    %25 = vector.shape_cast %24 : vector<1x1x32x1xf32> to vector<32x1xf32>
    %26 = vector.broadcast %23 : vector<32x1xf32> to vector<32x16xf32>
    %27 = arith.mulf %21, %26 : vector<32x16xf32>
    %28 = vector.broadcast %25 : vector<32x1xf32> to vector<32x16xf32>
    %29 = arith.addf %27, %28 : vector<32x16xf32>
    %c0_14 = arith.constant 0 : index
    %c0_15 = arith.constant 0 : index
    %c0_16 = arith.constant 0 : index
    %30 = vector.load %arg4[%c0_14, %c0_15, %c0_16] : memref<1x32x16xf32, #tpu.memory_space<vmem>>, vector<1x32x16xf32>
    %31 = vector.shape_cast %30 : vector<1x32x16xf32> to vector<32x16xf32>
    %32 = vector.shape_cast %29 : vector<32x16xf32> to vector<1x32x16xf32>
    tpu.vector_store %arg4[%c0_14, %c0_15, %c0_16], %32 {strides = array<i32>} : memref<1x32x16xf32, #tpu.memory_space<vmem>>, vector<1x32x16xf32>,
    return
  }
  func.func @transform_0(%arg0: i32, %arg1: i32) -> (i32, i32, i32) {
    %c0_i32 = arith.constant 0 : i32
    %c0_i32_0 = arith.constant 0 : i32
    return %arg0, %c0_i32, %arg1 : i32, i32, i32
  }
  func.func @transform_1(%arg0: i32, %arg1: i32) -> (i32, i32, i32, i32) {
    %c0_i32 = arith.constant 0 : i32
    %c0_i32_0 = arith.constant 0 : i32
    %c0_i32_1 = arith.constant 0 : i32
    %c0_i32_2 = arith.constant 0 : i32
    return %arg0, %c0_i32, %c0_i32_0, %c0_i32_1 : i32, i32, i32, i32
  }
  func.func @transform_2(%arg0: i32, %arg1: i32) -> (i32, i32, i32) {
    %c0_i32 = arith.constant 0 : i32
    %c0_i32_0 = arith.constant 0 : i32
    return %arg0, %c0_i32, %arg1 : i32, i32, i32
  }
}

</mosaic_0001>

<bundles_post_ra>
// kernel: tpu_custom_call.1
= control target key start
LH: loop header
LB: loop body
LE: loop exit
PB: predicated region body
PF: predicated region fallthrough
CT: control target
= control target key end

     0   :  { %s500_s9 = smov 0   ;;  %s502_s10 = smov 0   ;;  %s562_s0 = inlined_call_operand.vmem [shape: f32[2,32,16], index: 0, kind: input, shape index: {}]   ;;  %s563_s1 = inlined_call_operand.vmem [shape: f32[2,2,32,1], index: 1, kind: input, shape index: {}]   ;;  %s564_s2 = inlined_call_operand.vmem [shape: f32[2,32,16], index: 2, kind: output, shape index: {}]  }
   0x1   :  { %s504_s11 = smov 0  }
   0x2 LB: > { %s24_s12 = sadd.s32 1, %s478_s10  ;;  %p414_p0 = scmp.ge.s32.totalorder %s482_s11, 1  ;;  %s482_s11 = sphi %s504_s11, %s12_s11   ;;  %s478_s10 = sphi %s502_s10, %s566_s10   ;;  %s474_s9 = sphi %s500_s9, %s565_s9  }
   0x3   : > { %p26_p1 = scmp.ge.s32.totalorder %s24_s12, 2  ;;  %p141_p2 = scmp.lt.s32.totalorder %s482_s11, 3 }
   0x5   : > { %s568_s12 = smov (%p26_p1, %s24_s12), 0  ;;  %p142_p3 = pnand %p414_p0, %p141_p2 }
   0x6   : > { %p174_p4 = scmp.lt.s32.totalorder (!%p142_p3), %s474_s9, 1 }
   0x7   : > { %145 = sbr.rel (%p142_p3) target bundleno = 151 (0x97), region = 28 }
   0xc   : > { %v484_v0 = vmov 0   ;;  %s570_s9 = smov (!%p174_p4, %s474_s9), 1  ;;  %vm199_vm0 = vcmask 130048  }
   0xd   : > { %456 = vset.pattern.permute.xlu1 %v484_v0  ;;  %455 = vset.pattern.permute.xlu0 %v484_v0  ;;  %s428_s13 = sshll.u32 %s570_s9, 6  ;;  %s427_s17 = sshll.u32 %s570_s9, 5 }
   0xe   : > { %457 = vset.pattern.permute.xlu2 %v484_v0  ;;  %s186_s16 = scalar_lea.vmem %s563_s1, %s428_s13  ;;  %s181_s20 = scalar_lea.vmem %s562_s0, %s427_s17 }
   0xf   : > { %v256_v1 = vld [vmem:[%s186_s16 + $0x10] sm:$0xff]  ;;  %v254_v2 = vld [vmem:[%s186_s16] sm:$0xff]  ;;  %v257_v4 = vld [vmem:[%s186_s16 + $0x18] sm:$0xff]  ;;  %s194_s23 = scalar_lea.vmem %s564_s2, %s427_s17 }
  0x10   : > { %275 = vperm.xlu1 %456, %v256_v1   ;;  %265 = vperm.xlu0 %455, %v254_v2   ;;  %v421_v3 = vld [vmem:[%s186_s16 + $0x20] sm:$0xff]  ;;  %v255_v5 = vld [vmem:[%s186_s16 + $0x8] sm:$0xff]  ;;  %v424_v7 = vld [vmem:[%s186_s16 + $0x38] sm:$0xff] }
  0x11   : > { %289 = vperm.xlu2 %457, %v421_v3   ;;  %v422_v6 = vld [vmem:[%s186_s16 + $0x28] sm:$0xff]  ;;  %v423_v8 = vld [vmem:[%s186_s16 + $0x30] sm:$0xff]  ;;  %v195_v9 = vld [vmem:[%s181_s20] sm:$0xff] }
  0x12   : > { %v196_v10 = vld [vmem:[%s181_s20 + $0x8] sm:$0xff]  ;;  %v200_v11 = vsel %vm199_vm0, %v195_v9, 0.0  ;;  %v213_v13 = vmul.f32 %v195_v9, %v195_v9  ;;  %v532_v15 = vld [vmem:[%s181_s20 + $0x10] sm:$0xff]  ;;  %v198_v21 = vld [vmem:[%s181_s20 + $0x18] sm:$0xff] }
  0x13   : > { %v201_v12 = vsel %vm199_vm0, %v196_v10, 0.0  ;;  %v214_v14 = vmul.f32 %v196_v10, %v196_v10  ;;  %v203_v17 = vsel %vm199_vm0, %v532_v15, 0.0  ;;  %v215_v18 = vmul.f32 %v532_v15, %v532_v15 }
  0x14   : > { %v202_v16 = vadd.f32 %v201_v12, %v200_v11  ;;  %v217_v19 = vsel %vm199_vm0, %v213_v13, 0.0  ;;  %v205_v24 = vsel %vm199_vm0, %v198_v21, 0.0  ;;  %v216_v25 = vmul.f32 %v198_v21, %v198_v21 }
  0x15   : > { %v218_v20 = vsel %vm199_vm0, %v214_v14, 0.0  ;;  %v220_v26 = vsel %vm199_vm0, %v215_v18, 0.0 }
  0x16   : > { %v204_v22 = vadd.f32 %v203_v17, %v202_v16  ;;  %v219_v23 = vadd.f32 %v218_v20, %v217_v19  ;;  %v222_v29 = vsel %vm199_vm0, %v216_v25, 0.0 }
  0x18   : > { %280 = vperm.xlu1 %456, %v257_v4   ;;  %270 = vperm.xlu0 %455, %v255_v5   ;;  %v206_v27 = vadd.f32 %v205_v24, %v204_v22  ;;  %v221_v28 = vadd.f32 %v220_v26, %v219_v23 }
  0x19   : > { %294 = vperm.xlu2 %457, %v422_v6  }
  0x1a   : > { %v207_v30 = vrot.slane %v206_v27, 4  ;;  %v223_v31 = vadd.f32 %v222_v29, %v221_v28 }
  0x1c   : > { %v208_v32 = vadd.f32 %v207_v30, %v206_v27  ;;  %v224_v33 = vrot.slane %v223_v31, 4 }
  0x1e   : > { %v209_v34 = vrot.slane %v208_v32, 2  ;;  %v225_v35 = vadd.f32 %v224_v33, %v223_v31 }
  0x20   : > { %304 = vperm.xlu1 %456, %v424_v7   ;;  %299 = vperm.xlu0 %455, %v423_v8   ;;  %v210_v36 = vadd.f32 %v209_v34, %v208_v32  ;;  %v226_v37 = vrot.slane %v225_v35, 2 }
  0x22   : > { %v211_v38 = vrot.slane %v210_v36, 1  ;;  %v227_v39 = vadd.f32 %v226_v37, %v225_v35 }
  0x24   : > { %v212_v40 = vadd.f32 %v211_v38, %v210_v36  ;;  %v228_v41 = vrot.slane %v227_v39, 1 }
  0x26   : > { %v229_v42 = vadd.f32 %v228_v41, %v227_v39  ;;  %v230_v43 = vmul.f32 0.03125, %v212_v40 }
  0x28   : > { %v231_v44 = vmul.f32 0.03125, %v229_v42  ;;  %v232_v45 = vmul.f32 %v230_v43, %v230_v43  ;;  %v235_v55 = vsub.f32 %v195_v9, %v230_v43  ;;  %v236_v62 = vsub.f32 %v196_v10, %v230_v43 }
  0x29   : > { %v237_v1 = vsub.f32 %v532_v15, %v230_v43  ;;  %v238_v2 = vsub.f32 %v198_v21, %v230_v43 }
  0x2a   : > { %v233_v46 = vsub.f32 %v231_v44, %v232_v45 }
  0x2c   : > { %v234_v47 = vmax.f32 %v233_v46, 0.0 }
  0x2e   : > { %v239_v48 = vadd.f32 1e-05, %v234_v47 }
  0x30   : > { %458 = vrsqrt.f32 %v239_v48  ;;  %vm246_vm1 = vweird.f32 %v239_v48 }
  0x36   : > { %v459_v49 = vpop.eup %458 }
  0x37   : > { %v241_v50 = vmul.f32 %v459_v49, %v239_v48  ;;  %vm247_vm2 = vweird.f32 %v459_v49 }
  0x38   : > { %vm248_vm3 = vmor %vm246_vm1, %vm247_vm2 }
  0x39   : > { %v242_v51 = vmul.f32 %v459_v49, %v241_v50 }
  0x3b   : > { %v243_v52 = vmul.f32 0.5, %v242_v51 }
  0x3d   : > { %v244_v53 = vsub.f32 1.5, %v243_v52 }
  0x3f   : > { %v245_v54 = vmul.f32 %v459_v49, %v244_v53 }
  0x41   : > { %v249_v56 = vsel %vm248_vm3, %v459_v49, %v245_v54 }
  0x42   : > { %v250_v57 = vmul.f32 %v249_v56, %v235_v55  ;;  %v251_v0 = vmul.f32 %v249_v56, %v236_v62  ;;  %v252_v7 = vmul.f32 %v249_v56, %v237_v1  ;;  %v253_v8 = vmul.f32 %v249_v56, %v238_v2 }
  0x6b   : > { %v290_v58 = vpop.permute.xlu2 %289 }
  0x73   : > { %v295_v6 = vpop.permute.xlu2 %294 }
  0x82   : > { %v276_v59 = vpop.permute.xlu1 %275  ;;  %v266_v60 = vpop.permute.xlu0 %265 }
  0x83   : > { %v283_v61 = vmul.f32 %v266_v60, %v250_v57  ;;  %v285_v10 = vmul.f32 %v276_v59, %v252_v7 }
  0x85   : > { %v307_v63 = vadd.f32 %v290_v58, %v283_v61 }
  0x87   : > { %311 = vst.msk [vmem:[%s194_s23] sm:$0xff] %vm199_vm0, %v307_v63 }
  0x8a   : > { %v281_v3 = vpop.permute.xlu1 %280  ;;  %v271_v4 = vpop.permute.xlu0 %270 }
  0x8b   : > { %v284_v5 = vmul.f32 %v271_v4, %v251_v0  ;;  %v286_v11 = vmul.f32 %v281_v3, %v253_v8 }
  0x8d   : > { %v308_v9 = vadd.f32 %v295_v6, %v284_v5 }
  0x8f   : > { %312 = vst.msk [vmem:[%s194_s23 + $0x8] sm:$0xff] %vm199_vm0, %v308_v9 }
  0x92   : > { %v305_v12 = vpop.permute.xlu1 %304  ;;  %v300_v13 = vpop.permute.xlu0 %299 }
  0x93   : > { %v310_v14 = vadd.f32 %v305_v12, %v286_v11  ;;  %v309_v16 = vadd.f32 %v300_v13, %v285_v10 }
  0x95   : > { %314 = vst.msk [vmem:[%s194_s23 + $0x18] sm:$0xff] %vm199_vm0, %v310_v14 }
  0x96   : > { %313 = vst.msk [vmem:[%s194_s23 + $0x10] sm:$0xff] %vm199_vm0, %v309_v16 }
  0x97 PF: > { %s12_s11 = sadd.s32 1, %s482_s11   ;;  %s565_s9 = smov %s478_s10 }
  0x98   : > { %p9_p5 = scmp.ge.s32.totalorder %s12_s11, 4   ;;  %s566_s10 = smov %s568_s12 }
  0x9a   :  { %11 = sbr.rel (!%p9_p5) target bundleno = 2 (0x2), region = 62 }

</bundles_post_ra>
